<compile_context>
chip_gen: v5e
topology: v5e:2x2
jax: 0.10.0
libtpu: 0.0.40
codegen_flags: <defaults>
</compile_context>

<pallas_src>
import functools

import jax
import jax.numpy as jnp
from jax import lax
from jax.experimental import pallas as pl
from jax.experimental.pallas import tpu as pltpu

IN_FEATURES = 16
SAMPLES_PER_ROW = 128 // IN_FEATURES          # 8 samples per 128-lane packed row
MAX_TILE_ROWS = 8192                          # 65536 samples per grid step


def _round_up(n, m):
    return ((n + m - 1) // m) * m


def regressor_kernel(x_ref, w_ref, b_ref, o_ref):
    # x_ref: (tile_rows, 128) -- 8 samples per row, 16 features each
    # w_ref: (128, 8)         -- block-diagonal copies of the weight row
    # b_ref: (1, 8)           -- bias broadcast over the 8 sample slots
    # o_ref: (tile_rows, 8)   -- o[r, s] = y[8*r + s]
    y = jnp.dot(x_ref[...], w_ref[...],
                preferred_element_type=jnp.float32,
                precision=lax.Precision.HIGHEST)
    o_ref[...] = (y + b_ref[...]).astype(o_ref.dtype)


@functools.partial(jax.jit, static_argnames=("max_tile_rows",))
def regressor_forward(x, w, b, max_tile_rows=MAX_TILE_ROWS):
    """y = x @ w.T + b for nn.Linear(16, 1).  x: [N,16], w: [1,16], b: [1] -> [N,1]."""
    N, D = x.shape
    assert D == IN_FEATURES and 128 % D == 0
    x = x.astype(jnp.float32)

    # ---- lane-packed view of the batch: (rows, 128), 8 samples per row -------
    rows = pl.cdiv(N, SAMPLES_PER_ROW)
    tile_rows = min(max_tile_rows, _round_up(rows, 8))
    tile_rows = max(8, (tile_rows // 8) * 8)              # keep (8,128)-aligned
    rows_padded = _round_up(rows, tile_rows)
    n_padded = rows_padded * SAMPLES_PER_ROW
    if n_padded != N:
        x = jnp.pad(x, ((0, n_padded - N), (0, 0)))
    x_packed = x.reshape(rows_padded, SAMPLES_PER_ROW * D)    # free reshape

    # ---- block-diagonal weight: 16-lane segmented reduce + compaction == matmul
    w_row = w.reshape(D).astype(jnp.float32)                  # (16,)
    w_big = jnp.kron(jnp.eye(SAMPLES_PER_ROW, dtype=jnp.float32),
                     w_row.reshape(D, 1))                      # (128, 8)
    b_row = jnp.broadcast_to(b.reshape(1, 1).astype(jnp.float32),
                             (1, SAMPLES_PER_ROW))             # (1, 8)

    grid = (rows_padded // tile_rows,)
    out = pl.pallas_call(
        regressor_kernel,
        out_shape=jax.ShapeDtypeStruct((rows_padded, SAMPLES_PER_ROW), jnp.float32),
        grid=grid,
        in_specs=[
            pl.BlockSpec((tile_rows, SAMPLES_PER_ROW * D), lambda i: (i, 0)),
            pl.BlockSpec((SAMPLES_PER_ROW * D, SAMPLES_PER_ROW),
                         lambda i: (0, 0)),                    # VMEM-resident
            pl.BlockSpec((1, SAMPLES_PER_ROW), lambda i: (0, 0)),
        ],
        out_specs=pl.BlockSpec((tile_rows, SAMPLES_PER_ROW), lambda i: (i, 0)),
        compiler_params=pltpu.CompilerParams(
            dimension_semantics=("parallel",),     # v7x: 2 TCs split the batch
            vmem_limit_bytes=48 * 1024 * 1024,     # v5e scoped default is ~16 MiB
        ),
    )(x_packed, w_big, b_row)

    # (rows, 8) -> (N, 1): free contiguous reshape; drop padded tail samples.
    return out.reshape(n_padded, 1)[:N]


def init_params(key, in_features=IN_FEATURES, out_features=1):
    """PyTorch nn.Linear default init: U(-1/sqrt(in), 1/sqrt(in))."""
    kw, kb = jax.random.split(key)
    bound = 1.0 / (in_features ** 0.5)
    w = jax.random.uniform(kw, (out_features, in_features), jnp.float32, -bound, bound)
    b = jax.random.uniform(kb, (out_features,), jnp.float32, -bound, bound)
    return w, b


def reference_forward(x, w, b):
    return x @ w.T + b


if __name__ == "__main__":
    key = jax.random.PRNGKey(0)
    kx, kp = jax.random.split(key)

    # Small shape consistent with the module: 8 samples x 16 features.
    N = 8
    x = jax.random.normal(kx, (N, IN_FEATURES), jnp.float32)
    w, b = init_params(kp)

    out = jax.block_until_ready(regressor_forward(x, w, b))
    ref = reference_forward(x, w, b)
    assert out.shape == (N, 1), out.shape
    assert jnp.allclose(out, ref, atol=1e-5, rtol=1e-5), "mismatch vs reference"

    # Exercise padding + a multi-step grid with a small forced tile.
    N2 = 200
    x2 = jax.random.normal(kx, (N2, IN_FEATURES), jnp.float32)
    out2 = jax.block_until_ready(regressor_forward(x2, w, b, max_tile_rows=16))
    ref2 = reference_forward(x2, w, b)
    assert out2.shape == (N2, 1), out2.shape
    assert jnp.allclose(out2, ref2, atol=1e-5, rtol=1e-5), "mismatch (tiled path)"

    print("KERNEL_OK")
</pallas_src>

<mosaic_0001>
module attributes {stable_mosaic.version = 11 : i64} {
  func.func @regressor_kernel(%arg0: i32, %arg1: memref<8x128xf32, #tpu.memory_space<vmem>>, %arg2: memref<128x8xf32, #tpu.memory_space<vmem>>, %arg3: memref<1x8xf32, #tpu.memory_space<vmem>>, %arg4: memref<8x8xf32, #tpu.memory_space<vmem>>) attributes {dimension_semantics = [#tpu.dimension_semantics<parallel>], iteration_bounds = array<i64: 1>, scalar_prefetch = 0 : i64, scratch_operands = 0 : i64, tpu.core_type = #tpu.core_type<tc>, window_params = [{transform_indices = @transform_0, window_bounds = array<i64: 8, 128>}, {pipeline_mode = #tpu.pipeline_mode<synchronous>, transform_indices = @transform_1, window_bounds = array<i64: 128, 8>}, {pipeline_mode = #tpu.pipeline_mode<synchronous>, transform_indices = @transform_2, window_bounds = array<i64: 1, 8>}, {transform_indices = @transform_3, window_bounds = array<i64: 8, 8>}]} {
    %c0 = arith.constant 0 : index
    %c0_0 = arith.constant 0 : index
    %0 = vector.load %arg1[%c0, %c0_0] : memref<8x128xf32, #tpu.memory_space<vmem>>, vector<8x128xf32>
    %c0_1 = arith.constant 0 : index
    %c0_2 = arith.constant 0 : index
    %1 = vector.load %arg2[%c0_1, %c0_2] : memref<128x8xf32, #tpu.memory_space<vmem>>, vector<128x8xf32>
    %cst = arith.constant dense<0.000000e+00> : vector<8x8xf32>
    %2 = tpu.matmul %0, %1, %cst {dimension_numbers = #tpu.dot_dimension_numbers<[1], [0], [0], [1], [0, 0, 1, 1], [], []>, precision = #tpu.contract_precision<fp32>} : vector<8x128xf32>, vector<128x8xf32>, vector<8x8xf32> -> vector<8x8xf32>
    %c0_3 = arith.constant 0 : index
    %c0_4 = arith.constant 0 : index
    %3 = vector.load %arg3[%c0_3, %c0_4] : memref<1x8xf32, #tpu.memory_space<vmem>>, vector<1x8xf32>
    %4 = vector.broadcast %3 : vector<1x8xf32> to vector<8x8xf32>
    %5 = arith.addf %2, %4 : vector<8x8xf32>
    %c0_5 = arith.constant 0 : index
    %c0_6 = arith.constant 0 : index
    %6 = vector.load %arg4[%c0_5, %c0_6] : memref<8x8xf32, #tpu.memory_space<vmem>>, vector<8x8xf32>
    tpu.vector_store %arg4[%c0_5, %c0_6], %5 {strides = array<i32>} : memref<8x8xf32, #tpu.memory_space<vmem>>, vector<8x8xf32>,
    return
  }
  func.func @transform_0(%arg0: i32) -> (i32, i32) {
    %c0_i32 = arith.constant 0 : i32
    %c0_i32_0 = arith.constant 0 : i32
    return %arg0, %c0_i32 : i32, i32
  }
  func.func @transform_1(%arg0: i32) -> (i32, i32) {
    %c0_i32 = arith.constant 0 : i32
    %c0_i32_0 = arith.constant 0 : i32
    %c0_i32_1 = arith.constant 0 : i32
    return %c0_i32, %c0_i32_0 : i32, i32
  }
  func.func @transform_2(%arg0: i32) -> (i32, i32) {
    %c0_i32 = arith.constant 0 : i32
    %c0_i32_0 = arith.constant 0 : i32
    %c0_i32_1 = arith.constant 0 : i32
    return %c0_i32, %c0_i32_0 : i32, i32
  }
  func.func @transform_3(%arg0: i32) -> (i32, i32) {
    %c0_i32 = arith.constant 0 : i32
    %c0_i32_0 = arith.constant 0 : i32
    return %arg0, %c0_i32 : i32, i32
  }
}

</mosaic_0001>

<bundles_post_ra>
// kernel: regressor_forward.1
= control target key start
LH: loop header
LB: loop body
LE: loop exit
PB: predicated region body
PF: predicated region fallthrough
CT: control target
= control target key end

     0   :  { %vm376_vm0 = vcmask 64512   ;;  %s698_s1 = inlined_call_operand.vmem [shape: f32[128,8], index: 1, kind: input, shape index: {}]   ;;  %s699_s2 = inlined_call_operand.vmem [shape: f32[1,8], index: 2, kind: input, shape index: {}]   ;;  %s700_s0 = inlined_call_operand.vmem [shape: f32[8,128], index: 0, kind: input, shape index: {}]   ;;  %s701_s3 = inlined_call_operand.vmem [shape: f32[8,8], index: 3, kind: output, shape index: {}]  }
   0x1   :  { %v30_v0 = vld [vmem:[%s698_s1 + $0x78] sm:$0xff]  ;;  %v29_v1 = vld [vmem:[%s698_s1 + $0x70] sm:$0xff]  ;;  %v28_v2 = vld [vmem:[%s698_s1 + $0x68] sm:$0xff] }
   0x2   :  { %v412_v3 = vand.u32 4294901760, %v30_v0  ;;  %v414_v4 = vand.u32 4294901760, %v29_v1  ;;  %v416_v5 = vand.u32 4294901760, %v28_v2  ;;  %v27_v6 = vld [vmem:[%s698_s1 + $0x60] sm:$0xff]  ;;  %v26_v7 = vld [vmem:[%s698_s1 + $0x58] sm:$0xff]  ;;  %v25_v8 = vld [vmem:[%s698_s1 + $0x50] sm:$0xff] }
   0x3   :  { %v427_v9 = vand.u32 4294901760, %v27_v6  ;;  %v429_v10 = vand.u32 4294901760, %v26_v7  ;;  %v431_v11 = vand.u32 4294901760, %v25_v8  ;;  %v24_v12 = vld [vmem:[%s698_s1 + $0x48] sm:$0xff]  ;;  %v23_v13 = vld [vmem:[%s698_s1 + $0x40] sm:$0xff]  ;;  %v22_v21 = vld [vmem:[%s698_s1 + $0x38] sm:$0xff] }
   0x4   :  { %36 = vmatpush.msra.mxu0 %v412_v3  ;;  %v441_v14 = vsub.f32 %v30_v0, %v412_v3  ;;  %v444_v15 = vsub.f32 %v29_v1, %v414_v4  ;;  %v447_v16 = vsub.f32 %v28_v2, %v416_v5  ;;  %v449_v17 = vand.u32 4294901760, %v24_v12  ;;  %232 = vmatpush.msra.mxu3 %v412_v3  ;;  %v21_v34 = vld [vmem:[%s698_s1 + $0x30] sm:$0xff]  ;;  %v20_v35 = vld [vmem:[%s698_s1 + $0x28] sm:$0xff]  ;;  %v19_v42 = vld [vmem:[%s698_s1 + $0x20] sm:$0xff] }
   0x5   :  { %v453_v18 = vsub.f32 %v27_v6, %v427_v9  ;;  %v456_v19 = vsub.f32 %v26_v7, %v429_v10  ;;  %v458_v20 = vand.u32 4294901760, %v23_v13  ;;  %v468_v25 = vsub.f32 %v25_v8, %v431_v11  ;;  %v18_v47 = vld [vmem:[%s698_s1 + $0x18] sm:$0xff]  ;;  %v17_v53 = vld [vmem:[%s698_s1 + $0x10] sm:$0xff]  ;;  %v16_v61 = vld [vmem:[%s698_s1 + $0x8] sm:$0xff] }
   0x6   :  { %38 = vmatpush.msra.mxu0 %v414_v4  ;;  %v78_v22 = vand.u32 4294901760, %v441_v14  ;;  %v84_v23 = vand.u32 4294901760, %v444_v15  ;;  %v90_v24 = vand.u32 4294901760, %v447_v16  ;;  %179 = vmatpush.msra.mxu2 %v441_v14  ;;  %v474_v28 = vsub.f32 %v24_v12, %v449_v17  ;;  %v15_v2 = vld [vmem:[%s698_s1] sm:$0xff] }
   0x7   :  { %v96_v26 = vand.u32 4294901760, %v453_v18  ;;  %v102_v27 = vand.u32 4294901760, %v456_v19  ;;  %234 = vmatpush.msra.mxu3 %v414_v4  ;;  %v487_v32 = vand.u32 4294901760, %v22_v21  ;;  %v491_v33 = vsub.f32 %v23_v13, %v458_v20 }
   0x8   :  { %v79_v29 = vsub.f32 %v441_v14, %v78_v22  ;;  %40 = vmatpush.msra.mxu0 %v416_v5  ;;  %v85_v30 = vsub.f32 %v444_v15, %v84_v23  ;;  %v91_v31 = vsub.f32 %v447_v16, %v90_v24  ;;  %182 = vmatpush.msra.mxu2 %v444_v15  ;;  %v108_v39 = vand.u32 4294901760, %v468_v25 }
   0x9   :  { %236 = vmatpush.msra.mxu3 %v416_v5  ;;  %v97_v38 = vsub.f32 %v453_v18, %v96_v26  ;;  %v103_v40 = vsub.f32 %v456_v19, %v102_v27  ;;  %v114_v41 = vand.u32 4294901760, %v474_v28  ;;  %v515_v44 = vand.u32 4294901760, %v21_v34 }
   0xa   :  { %v80_v36 = vand.u32 4294901760, %v79_v29  ;;  %v86_v37 = vand.u32 4294901760, %v85_v30  ;;  %42 = vmatpush.msra.mxu0 %v427_v9  ;;  %185 = vmatpush.msra.mxu2 %v447_v16  ;;  %v92_v43 = vand.u32 4294901760, %v91_v31  ;;  %v518_v45 = vsub.f32 %v22_v21, %v487_v32  ;;  %v14_v29 = vld [vmem:[%s700_s0] sm:$0xff] }
   0xb   :  { %238 = vmatpush.msra.mxu3 %v427_v9  ;;  %v520_v46 = vand.u32 4294901760, %v20_v35  ;;  %v120_v48 = vand.u32 4294901760, %v491_v33  ;;  %v98_v49 = vand.u32 4294901760, %v97_v38  ;;  %v109_v50 = vsub.f32 %v468_v25, %v108_v39 }
   0xc   :  { %81 = vmatpush.msra.mxu1 %v80_v36  ;;  %44 = vmatpush.msra.mxu0 %v429_v10  ;;  %v533_v51 = vsub.f32 %v21_v34, %v515_v44  ;;  %v535_v52 = vand.u32 4294901760, %v19_v42  ;;  %v540_v54 = vand.u32 4294901760, %v18_v47  ;;  %v104_v55 = vand.u32 4294901760, %v103_v40 }
   0xd   :  { %188 = vmatpush.msra.mxu2 %v453_v18  ;;  %240 = vmatpush.msra.mxu3 %v429_v10  ;;  %v115_v56 = vsub.f32 %v474_v28, %v114_v41  ;;  %v126_v57 = vand.u32 4294901760, %v518_v45  ;;  %v550_v58 = vsub.f32 %v20_v35, %v520_v46  ;;  %v121_v59 = vsub.f32 %v491_v33, %v120_v48 }
   0xe   :  { %87 = vmatpush.msra.mxu1 %v86_v37  ;;  %46 = vmatpush.msra.mxu0 %v431_v11  ;;  %v555_v60 = vand.u32 4294901760, %v17_v53  ;;  %v110_v62 = vand.u32 4294901760, %v109_v50  ;;  %v132_v63 = vand.u32 4294901760, %v533_v51  ;;  %v565_v0 = vsub.f32 %v19_v42, %v535_v52 }
   0xf   :  { %191 = vmatpush.msra.mxu2 %v456_v19  ;;  %242 = vmatpush.msra.mxu3 %v431_v11  ;;  %v568_v1 = vsub.f32 %v18_v47, %v540_v54  ;;  %v116_v6 = vand.u32 4294901760, %v115_v56  ;;  %v127_v7 = vsub.f32 %v518_v45, %v126_v57  ;;  %v138_v8 = vand.u32 4294901760, %v550_v58 }
  0x10   :  { %93 = vmatpush.msra.mxu1 %v92_v43  ;;  %48 = vmatpush.msra.mxu0 %v449_v17  ;;  %v580_v12 = vand.u32 4294901760, %v16_v61  ;;  %v122_v13 = vand.u32 4294901760, %v121_v59  ;;  %v583_v21 = vsub.f32 %v17_v53, %v555_v60  ;;  %v133_v30 = vsub.f32 %v533_v51, %v132_v63 }
  0x11   :  { %194 = vmatpush.msra.mxu2 %v468_v25  ;;  %244 = vmatpush.msra.mxu3 %v449_v17  ;;  %v144_v31 = vand.u32 4294901760, %v565_v0  ;;  %v595_v34 = vand.u32 4294901760, %v15_v2  ;;  %v597_v35 = vand.u32 4294901760, %v14_v29  ;;  %v150_v36 = vand.u32 4294901760, %v568_v1 }
  0x12   :  { %99 = vmatpush.msra.mxu1 %v98_v49  ;;  %50 = vmatpush.msra.mxu0 %v458_v20  ;;  %v128_v37 = vand.u32 4294901760, %v127_v7  ;;  %v139_v38 = vsub.f32 %v550_v58, %v138_v8  ;;  %v607_v40 = vsub.f32 %v16_v61, %v580_v12  ;;  %v134_v43 = vand.u32 4294901760, %v133_v30 }
  0x13   :  { %197 = vmatpush.msra.mxu2 %v474_v28  ;;  %246 = vmatpush.msra.mxu3 %v458_v20  ;;  %v68_v42 = vsub.f32 %v14_v29, %v597_v35  ;;  %v145_v47 = vsub.f32 %v565_v0, %v144_v31  ;;  %v156_v49 = vand.u32 4294901760, %v583_v21  ;;  %v618_v50 = vsub.f32 %v15_v2, %v595_v34 }
  0x14   :  { %105 = vmatpush.msra.mxu1 %v104_v55  ;;  %52 = vmatpush.msra.mxu0 %v487_v32  ;;  %v140_v53 = vand.u32 4294901760, %v139_v38  ;;  %v151_v55 = vsub.f32 %v568_v1, %v150_v36  ;;  %v162_v56 = vand.u32 4294901760, %v607_v40 }
  0x15   :  { %200 = vmatpush.msra.mxu2 %v491_v33  ;;  %248 = vmatpush.msra.mxu3 %v487_v32  ;;  %v69_v59 = vand.u32 4294901760, %v68_v42  ;;  %v146_v61 = vand.u32 4294901760, %v145_v47  ;;  %v168_v2 = vand.u32 4294901760, %v618_v50 }
  0x16   :  { %111 = vmatpush.msra.mxu1 %v110_v62  ;;  %54 = vmatpush.msra.mxu0 %v515_v44  ;;  %v157_v62 = vsub.f32 %v583_v21, %v156_v49  ;;  %v163_v7 = vsub.f32 %v607_v40, %v162_v56 }
  0x17   :  { %203 = vmatpush.msra.mxu2 %v518_v45  ;;  %250 = vmatpush.msra.mxu3 %v515_v44  ;;  %v169_v30 = vsub.f32 %v618_v50, %v168_v2 }
  0x18   :  { %117 = vmatpush.msra.mxu1 %v116_v6  ;;  %56 = vmatpush.msra.mxu0 %v520_v46  ;;  %v152_v6 = vand.u32 4294901760, %v151_v55  ;;  %v158_v29 = vand.u32 4294901760, %v157_v62 }
  0x19   :  { %206 = vmatpush.msra.mxu2 %v533_v51  ;;  %252 = vmatpush.msra.mxu3 %v520_v46 }
  0x1a   :  { %123 = vmatpush.msra.mxu1 %v122_v13  ;;  %58 = vmatpush.msra.mxu0 %v535_v52  ;;  %v70_v13 = vsub.f32 %v68_v42, %v69_v59 }
  0x1b   :  { %209 = vmatpush.msra.mxu2 %v550_v58  ;;  %254 = vmatpush.msra.mxu3 %v535_v52 }
  0x1c   :  { %129 = vmatpush.msra.mxu1 %v128_v37  ;;  %60 = vmatpush.msra.mxu0 %v540_v54  ;;  %v164_v37 = vand.u32 4294901760, %v163_v7  ;;  %v71_v38 = vand.u32 4294901760, %v70_v13 }
  0x1d   :  { %212 = vmatpush.msra.mxu2 %v565_v0  ;;  %256 = vmatpush.msra.mxu3 %v540_v54 }
  0x1e   :  { %135 = vmatpush.msra.mxu1 %v134_v43  ;;  %62 = vmatpush.msra.mxu0 %v555_v60  ;;  %v170_v43 = vand.u32 4294901760, %v169_v30 }
  0x1f   :  { %215 = vmatpush.msra.mxu2 %v568_v1  ;;  %258 = vmatpush.msra.mxu3 %v555_v60 }
  0x20   :  { %141 = vmatpush.msra.mxu1 %v140_v53  ;;  %64 = vmatpush.msra.mxu0 %v580_v12 }
  0x21   :  { %218 = vmatpush.msra.mxu2 %v583_v21  ;;  %260 = vmatpush.msra.mxu3 %v580_v12 }
  0x22   :  { %147 = vmatpush.msra.mxu1 %v146_v61  ;;  %66 = vmatpush.msra.mxu0 %v595_v34 }
  0x23   :  { %221 = vmatpush.msra.mxu2 %v607_v40  ;;  %262 = vmatpush.msra.mxu3 %v595_v34 }
  0x24   :  { %273 = vmatpush.msrb.mxu0 %v78_v22  ;;  %153 = vmatpush.msra.mxu1 %v152_v6 }
  0x25   :  { %224 = vmatpush.msra.mxu2 %v618_v50  ;;  %266 = vmatmul.f32.vlgmr.msra.gmra.mxu3 %v69_v59 }
  0x26   :  { %277 = vmatpush.msrb.mxu0 %v84_v23  ;;  %159 = vmatpush.msra.mxu1 %v158_v29 }
  0x27   :  { %227 = vmatmul.f32.vlgmr.msra.gmra.mxu2 %v68_v42  ;;  %72 = vmatmul.f32.vlgmr.msra.gmra.mxu0 %v71_v38 }
  0x28   :  { %281 = vmatpush.msrb.mxu0 %v90_v24  ;;  %165 = vmatpush.msra.mxu1 %v164_v37 }
  0x2a   :  { %285 = vmatpush.msrb.mxu0 %v96_v26  ;;  %171 = vmatpush.msra.mxu1 %v170_v43 }
  0x2b   :  { %173 = vmatmul.f32.vlgmr.msra.gmra.mxu1 %v597_v35 }
  0x2c   :  { %340 = vmatpush.msrb.mxu1 %v412_v3  ;;  %289 = vmatpush.msrb.mxu0 %v102_v27  ;;  %v382_v3 = vld [vmem:[%s699_s2] ss:$0 sm:$0xff] }
  0x2e   :  { %342 = vmatpush.msrb.mxu1 %v414_v4  ;;  %293 = vmatpush.msrb.mxu0 %v108_v39 }
  0x30   :  { %344 = vmatpush.msrb.mxu1 %v416_v5  ;;  %297 = vmatpush.msrb.mxu0 %v114_v41 }
  0x32   :  { %346 = vmatpush.msrb.mxu1 %v427_v9  ;;  %301 = vmatpush.msrb.mxu0 %v120_v48 }
  0x34   :  { %348 = vmatpush.msrb.mxu1 %v429_v10  ;;  %305 = vmatpush.msrb.mxu0 %v126_v57 }
  0x36   :  { %350 = vmatpush.msrb.mxu1 %v431_v11  ;;  %309 = vmatpush.msrb.mxu0 %v132_v63 }
  0x38   :  { %352 = vmatpush.msrb.mxu1 %v449_v17  ;;  %313 = vmatpush.msrb.mxu0 %v138_v8 }
  0x3a   :  { %354 = vmatpush.msrb.mxu1 %v458_v20  ;;  %317 = vmatpush.msrb.mxu0 %v144_v31 }
  0x3c   :  { %356 = vmatpush.msrb.mxu1 %v487_v32  ;;  %321 = vmatpush.msrb.mxu0 %v150_v36 }
  0x3e   :  { %358 = vmatpush.msrb.mxu1 %v515_v44  ;;  %325 = vmatpush.msrb.mxu0 %v156_v49 }
  0x40   :  { %360 = vmatpush.msrb.mxu1 %v520_v46  ;;  %329 = vmatpush.msrb.mxu0 %v162_v56 }
  0x42   :  { %362 = vmatpush.msrb.mxu1 %v535_v52  ;;  %333 = vmatpush.msrb.mxu0 %v168_v2 }
  0x43   :  { %335 = vmatmul.f32.vlgmr.msrb.gmra.mxu0 %v597_v35 }
  0x44   :  { %364 = vmatpush.msrb.mxu1 %v540_v54 }
  0x46   :  { %366 = vmatpush.msrb.mxu1 %v555_v60 }
  0x48   :  { %368 = vmatpush.msrb.mxu1 %v580_v12 }
  0x4a   :  { %370 = vmatpush.msrb.mxu1 %v595_v34 }
  0x4b   :  { %372 = vmatmul.f32.vlgmr.msrb.gmra.mxu1 %v597_v35 }
  0xa4   :  { %v73_v4 = vpop.f32.mrf.mxu0 }
  0xa5   :  { %v74_v5 = vadd.f32 %v382_v3, %v73_v4 }
  0xa8   :  { %v174_v9 = vpop.f32.mrf.mxu1  ;;  %v267_v15 = vpop.f32.mrf.mxu3 }
  0xa9   :  { %v175_v10 = vadd.f32 %v174_v9, %v74_v5 }
  0xaa   :  { %v228_v11 = vpop.f32.mrf.mxu2 }
  0xab   :  { %v229_v14 = vadd.f32 %v228_v11, %v175_v10 }
  0xad   :  { %v268_v16 = vadd.f32 %v267_v15, %v229_v14 }
  0xc0   :  { %v336_v17 = vpop.f32.mrf.mxu0 }
  0xc1   :  { %v337_v18 = vadd.f32 %v336_v17, %v268_v16 }
  0xc8   :  { %v373_v19 = vpop.f32.mrf.mxu1 }
  0xc9   :  { %v374_v20 = vadd.f32 %v373_v19, %v337_v18 }
  0xcb   :  { %377 = vst.msk [vmem:[%s701_s3] sm:$0xff] %vm376_vm0, %v374_v20 }

</bundles_post_ra>
